<compile_context>
chip_gen: v7x
topology: tpu7x:2x2x1
jax: 0.10.0
libtpu: 0.0.40
codegen_flags: <defaults>
</compile_context>

<pallas_src>
import functools
import math

import jax
import jax.numpy as jnp
from jax.experimental import pallas as pl
from jax.experimental.pallas import tpu as pltpu


# ----------------------------- in-kernel helpers -----------------------------

def _layernorm(x, g, b, eps):
    mean = jnp.mean(x, axis=-1, keepdims=True)
    var = jnp.mean((x - mean) ** 2, axis=-1, keepdims=True)
    return (x - mean) * jax.lax.rsqrt(var + eps) * g + b


def _gelu(x):
    # TODO(synk): HF BERT uses exact erf-GELU; tanh approximation used here.
    return 0.5 * x * (1.0 + jnp.tanh(0.7978845608028654 * (x + 0.044715 * x * x * x)))


# ----------------------------- Pallas kernels --------------------------------

def _embedding_ln_kernel(x_ref, g_ref, b_ref, o_ref, *, eps):
    o_ref[...] = _layernorm(x_ref[...], g_ref[...], b_ref[...], eps)


def embedding_layernorm(x, gamma, beta, eps=1e-12):
    H = x.shape[-1]
    return pl.pallas_call(
        functools.partial(_embedding_ln_kernel, eps=eps),
        out_shape=jax.ShapeDtypeStruct(x.shape, jnp.float32),
    )(x, gamma.reshape(1, H), beta.reshape(1, H))


def _encoder_layer_kernel(x_ref, mask_ref, qkv_w_ref, qkv_b_ref,
                          o_w_ref, o_b_ref, ln1_g_ref, ln1_b_ref,
                          i_w_ref, i_b_ref, f_w_ref, f_b_ref,
                          ln2_g_ref, ln2_b_ref, o_ref, ctx_ref,
                          *, B, S, nh, dh, eps):
    """One fully fused BERT encoder layer.

    x:    [B*S, H]  token rows (H = nh*dh on the lane axis)
    mask: [B, S]    additive attention mask (0 / -1e4)
    """
    H = nh * dh
    x = x_ref[...]

    # --- fused QKV projection: a single [H, 3H] matmul ---
    qkv = jnp.dot(x, qkv_w_ref[...], preferred_element_type=jnp.float32) + qkv_b_ref[...]
    scale = 1.0 / math.sqrt(dh)
    q = qkv[:, 0 * H:1 * H] * scale           # fold 1/sqrt(dh) into q once
    k = qkv[:, 1 * H:2 * H]
    v = qkv[:, 2 * H:3 * H]
    m = mask_ref[...]                          # [B, S]

    # --- multi-head attention; heads are lane-axis slices, everything in VMEM ---
    for b in range(B):
        r0 = b * S
        mb = m[b:b + 1, :]                     # [1, S] -> broadcast over query rows
        for h in range(nh):
            c0 = h * dh
            qb = q[r0:r0 + S, c0:c0 + dh]      # [S, dh]
            kb = k[r0:r0 + S, c0:c0 + dh]
            vb = v[r0:r0 + S, c0:c0 + dh]
            # scores = q @ k^T (contract on the last dim of both, no transpose)
            sc = jax.lax.dot_general(qb, kb, (((1,), (1,)), ((), ())),
                                     preferred_element_type=jnp.float32)
            sc = sc + mb
            sc = sc - jnp.max(sc, axis=-1, keepdims=True)
            p = jnp.exp(sc)
            p = p * pl.reciprocal(jnp.sum(p, axis=-1, keepdims=True), approx=True)
            ctx_ref[r0:r0 + S, c0:c0 + dh] = jnp.dot(
                p, vb, preferred_element_type=jnp.float32)

    ctx = ctx_ref[...]                         # [B*S, H]

    # --- output projection + residual LayerNorm (fused epilogue) ---
    attn_out = jnp.dot(ctx, o_w_ref[...], preferred_element_type=jnp.float32) + o_b_ref[...]
    x1 = _layernorm(attn_out + x, ln1_g_ref[...], ln1_b_ref[...], eps)

    # --- FFN (GELU) + residual LayerNorm (fused epilogue) ---
    h1 = _gelu(jnp.dot(x1, i_w_ref[...], preferred_element_type=jnp.float32) + i_b_ref[...])
    h2 = jnp.dot(h1, f_w_ref[...], preferred_element_type=jnp.float32) + f_b_ref[...]
    o_ref[...] = _layernorm(h2 + x1, ln2_g_ref[...], ln2_b_ref[...], eps)


def encoder_layer(x, mask_add, p, *, B, S, nh, eps=1e-12):
    H = x.shape[-1]
    dh = H // nh
    kernel = functools.partial(_encoder_layer_kernel, B=B, S=S, nh=nh, dh=dh, eps=eps)
    return pl.pallas_call(
        kernel,
        out_shape=jax.ShapeDtypeStruct((B * S, H), jnp.float32),
        scratch_shapes=[pltpu.VMEM((B * S, H), jnp.float32)],
    )(x, mask_add,
      p["qkv_w"], p["qkv_b"].reshape(1, -1),
      p["o_w"], p["o_b"].reshape(1, -1),
      p["ln1_g"].reshape(1, -1), p["ln1_b"].reshape(1, -1),
      p["i_w"], p["i_b"].reshape(1, -1),
      p["f_w"], p["f_b"].reshape(1, -1),
      p["ln2_g"].reshape(1, -1), p["ln2_b"].reshape(1, -1))


def _tail_kernel(s_ref, cls_ref, pw_ref, pb_ref, hw_ref, hb_ref, e_ref,
                 y_ref, norm_ref, gate_ref):
    """pooler(tanh) + all task heads (one wide matmul) + L2-normalize + HAT gates."""
    cls = cls_ref[...]                                            # [Mpad, H]
    pooled = jnp.tanh(
        jnp.dot(cls, pw_ref[...], preferred_element_type=jnp.float32) + pb_ref[...])
    y_ref[...] = jnp.dot(pooled, hw_ref[...],
                         preferred_element_type=jnp.float32) + hb_ref[...]
    nrm = jnp.sqrt(jnp.sum(pooled * pooled, axis=-1, keepdims=True))
    norm_ref[...] = pooled / jnp.maximum(nrm, 1e-12)              # F.normalize(dim=1)
    # 5 HAT gate rows packed into one [8, 128] tile -> one sigmoid
    gate_ref[...] = jax.nn.sigmoid(s_ref[0] * e_ref[...])


def pooler_heads_normalize_gates(cls_rows, pooler_w, pooler_b, heads_w, heads_b,
                                 e_padded, s):
    Mpad, H = cls_rows.shape
    Npad = heads_w.shape[1]
    s_arr = jnp.asarray([s], dtype=jnp.float32)
    vmem = pl.BlockSpec(memory_space=pltpu.MemorySpace.VMEM)
    return pl.pallas_call(
        _tail_kernel,
        out_shape=(jax.ShapeDtypeStruct((Mpad, Npad), jnp.float32),
                   jax.ShapeDtypeStruct((Mpad, H), jnp.float32),
                   jax.ShapeDtypeStruct(e_padded.shape, jnp.float32)),
        in_specs=[pl.BlockSpec(memory_space=pltpu.MemorySpace.SMEM),
                  vmem, vmem, vmem, vmem, vmem, vmem],
        out_specs=(vmem, vmem, vmem),
    )(s_arr, cls_rows, pooler_w, pooler_b.reshape(1, H),
      heads_w, heads_b.reshape(1, Npad), e_padded)


# ------------------------------ Mini BERT ------------------------------------

class Config:
    vocab_size = 50
    type_vocab_size = 2
    max_position = 16
    hidden = 32
    heads = 4
    intermediate = 64
    layers = 2


def _normal(key, shape, scale=0.02):
    return scale * jax.random.normal(key, shape, dtype=jnp.float32)


def init_bert_params(key, cfg):
    keys = iter(jax.random.split(key, 8 + 8 * cfg.layers))
    p = {
        "word_emb": _normal(next(keys), (cfg.vocab_size, cfg.hidden)),
        "pos_emb": _normal(next(keys), (cfg.max_position, cfg.hidden)),
        "type_emb": _normal(next(keys), (cfg.type_vocab_size, cfg.hidden)),
        "emb_ln_g": jnp.ones((cfg.hidden,), jnp.float32),
        "emb_ln_b": jnp.zeros((cfg.hidden,), jnp.float32),
        "pooler_w": _normal(next(keys), (cfg.hidden, cfg.hidden)),
        "pooler_b": jnp.zeros((cfg.hidden,), jnp.float32),
        "layers": [],
    }
    for _ in range(cfg.layers):
        layer = {
            # fused Q|K|V projection weights
            "qkv_w": _normal(next(keys), (cfg.hidden, 3 * cfg.hidden)),
            "qkv_b": jnp.zeros((3 * cfg.hidden,), jnp.float32),
            "o_w": _normal(next(keys), (cfg.hidden, cfg.hidden)),
            "o_b": jnp.zeros((cfg.hidden,), jnp.float32),
            "ln1_g": jnp.ones((cfg.hidden,), jnp.float32),
            "ln1_b": jnp.zeros((cfg.hidden,), jnp.float32),
            "i_w": _normal(next(keys), (cfg.hidden, cfg.intermediate)),
            "i_b": jnp.zeros((cfg.intermediate,), jnp.float32),
            "f_w": _normal(next(keys), (cfg.intermediate, cfg.hidden)),
            "f_b": jnp.zeros((cfg.hidden,), jnp.float32),
            "ln2_g": jnp.ones((cfg.hidden,), jnp.float32),
            "ln2_b": jnp.zeros((cfg.hidden,), jnp.float32),
        }
        p["layers"].append(layer)
    return p


def bert_forward(params, cfg, input_ids, segment_ids, input_mask):
    B, S = input_ids.shape
    H = cfg.hidden
    nh = cfg.heads

    # embedding gathers stay in JAX glue (data-dependent row gather)
    emb = (params["word_emb"][input_ids]
           + params["pos_emb"][:S][None, :, :]
           + params["type_emb"][segment_ids])
    x = emb.reshape(B * S, H).astype(jnp.float32)
    x = embedding_layernorm(x, params["emb_ln_g"], params["emb_ln_b"])

    # additive attention mask, [B, S]
    mask_add = (1.0 - input_mask.astype(jnp.float32)) * -10000.0

    for layer in params["layers"]:
        x = encoder_layer(x, mask_add, layer, B=B, S=S, nh=nh)

    return x.reshape(B, S, H)


# ----------------------------- HAT "Net" part --------------------------------

FILTER_NUM = [100, 100, 100]
GATE_LANES = 128
HEAD_LANES = 128


def init_hat_params(key, cfg, taskcla, nclasses=None, scenario="til"):
    num_tasks = len(taskcla)
    keys = iter(jax.random.split(key, 8 + 2 * max(1, num_tasks)))
    p = {
        "efc1": jax.random.normal(next(keys), (num_tasks, cfg.hidden), jnp.float32),
        "efc2": jax.random.normal(next(keys), (num_tasks, cfg.hidden), jnp.float32),
        "ec1": jax.random.normal(next(keys), (num_tasks, FILTER_NUM[0]), jnp.float32),
        "ec2": jax.random.normal(next(keys), (num_tasks, FILTER_NUM[1]), jnp.float32),
        "ec3": jax.random.normal(next(keys), (num_tasks, FILTER_NUM[2]), jnp.float32),
    }
    if "dil" in scenario:
        p["last"] = [(_normal(next(keys), (cfg.hidden, nclasses)),
                      jnp.zeros((nclasses,), jnp.float32))]
    else:  # 'til': one linear head per task
        p["last"] = [(_normal(next(keys), (cfg.hidden, n)),
                      jnp.zeros((n,), jnp.float32)) for (_, n) in taskcla]
    return p


def net_forward(bert_params, hat_params, taskcla, cfg,
                t, input_ids, segment_ids, input_mask, s, scenario="til"):
    output_dict = {}
    B, _S = input_ids.shape
    H = cfg.hidden

    sequence_output = bert_forward(bert_params, cfg, input_ids, segment_ids, input_mask)
    cls = sequence_output[:, 0, :]                                   # [B, H]

    # pad CLS rows to a full 8-sublane tile for the fused tail kernel
    Mpad = 8
    cls_rows = jnp.zeros((Mpad, H), jnp.float32).at[:B].set(cls)

    # concatenate all task heads into one lane-padded [H, 128] matmul
    ws = [w for (w, _) in hat_params["last"]]
    bs = [b for (_, b) in hat_params["last"]]
    head_sizes = [int(w.shape[1]) for w in ws]
    n_total = sum(head_sizes)
    heads_w = jnp.zeros((H, HEAD_LANES), jnp.float32).at[:, :n_total].set(
        jnp.concatenate(ws, axis=1))
    heads_b = jnp.zeros((HEAD_LANES,), jnp.float32).at[:n_total].set(
        jnp.concatenate(bs))

    # pack the 5 HAT gate embedding rows into one [8, 128] tile
    gate_rows = [hat_params["ec1"][t], hat_params["ec2"][t], hat_params["ec3"][t],
                 hat_params["efc1"][t], hat_params["efc2"][t]]
    gate_sizes = [int(r.shape[0]) for r in gate_rows]
    e_padded = jnp.zeros((8, GATE_LANES), jnp.float32)
    for i, r in enumerate(gate_rows):
        e_padded = e_padded.at[i, :r.shape[0]].set(r)

    # one fused launch: pooler + heads + normalize + gates
    y_all, norm_all, gates = pooler_heads_normalize_gates(
        cls_rows, bert_params["pooler_w"], bert_params["pooler_b"],
        heads_w, heads_b, e_padded, s)

    masks = [gates[i, :n] for i, n in enumerate(gate_sizes)]

    if "dil" in scenario:
        y = y_all[:B, :head_sizes[0]]
    else:  # 'til'
        y = []
        off = 0
        for n in head_sizes:
            y.append(y_all[:B, off:off + n])
            off += n

    output_dict["y"] = y
    output_dict["masks"] = masks
    output_dict["normalized_pooled_rep"] = norm_all[:B]
    return output_dict


# --------------------------------- main ---------------------------------------

if __name__ == "__main__":
    cfg = Config()
    taskcla = [(0, 3), (1, 3)]

    key = jax.random.PRNGKey(0)
    kb, kh, kin = jax.random.split(key, 3)
    bert_params = init_bert_params(kb, cfg)
    hat_params = init_hat_params(kh, cfg, taskcla)

    B, S = 2, 8
    k1, _ = jax.random.split(kin)
    input_ids = jax.random.randint(k1, (B, S), 0, cfg.vocab_size, dtype=jnp.int32)
    segment_ids = jnp.zeros((B, S), jnp.int32)
    input_mask = jnp.ones((B, S), jnp.int32)

    out = net_forward(bert_params, hat_params, taskcla, cfg,
                      t=0, input_ids=input_ids, segment_ids=segment_ids,
                      input_mask=input_mask, s=1.0, scenario="til")

    jax.block_until_ready(jax.tree_util.tree_leaves(out))
    print("KERNEL_OK")
</pallas_src>

<mosaic_0001>
module attributes {stable_mosaic.version = 11 : i64} {
  func.func @_embedding_ln_kernel(%arg0: memref<16x32xf32, #tpu.memory_space<vmem>>, %arg1: memref<1x32xf32, #tpu.memory_space<vmem>>, %arg2: memref<1x32xf32, #tpu.memory_space<vmem>>, %arg3: memref<16x32xf32, #tpu.memory_space<vmem>>) attributes {dimension_semantics = [], scalar_prefetch = 0 : i64, scratch_operands = 0 : i64, tpu.core_type = #tpu.core_type<tc>} {
    %c0 = arith.constant 0 : index
    %c0_0 = arith.constant 0 : index
    %0 = vector.load %arg0[%c0, %c0_0] : memref<16x32xf32, #tpu.memory_space<vmem>>, vector<16x32xf32>
    %c0_1 = arith.constant 0 : index
    %c0_2 = arith.constant 0 : index
    %1 = vector.load %arg1[%c0_1, %c0_2] : memref<1x32xf32, #tpu.memory_space<vmem>>, vector<1x32xf32>
    %c0_3 = arith.constant 0 : index
    %c0_4 = arith.constant 0 : index
    %2 = vector.load %arg2[%c0_3, %c0_4] : memref<1x32xf32, #tpu.memory_space<vmem>>, vector<1x32xf32>
    %cst = arith.constant dense<0.000000e+00> : vector<16xf32>
    %3 = vector.multi_reduction <add>, %0, %cst [1] : vector<16x32xf32> to vector<16xf32>
    %4 = vector.shape_cast %3 : vector<16xf32> to vector<16x1xf32>
    %cst_5 = arith.constant 3.200000e+01 : f32
    %5 = vector.broadcast %cst_5 : f32 to vector<16x1xf32>
    %6 = arith.divf %4, %5 : vector<16x1xf32>
    %7 = vector.broadcast %6 : vector<16x1xf32> to vector<16x32xf32>
    %8 = arith.subf %0, %7 : vector<16x32xf32>
    %9 = arith.mulf %8, %8 : vector<16x32xf32>
    %cst_6 = arith.constant dense<0.000000e+00> : vector<16xf32>
    %10 = vector.multi_reduction <add>, %9, %cst_6 [1] : vector<16x32xf32> to vector<16xf32>
    %11 = vector.shape_cast %10 : vector<16xf32> to vector<16x1xf32>
    %cst_7 = arith.constant 3.200000e+01 : f32
    %12 = vector.broadcast %cst_7 : f32 to vector<16x1xf32>
    %13 = arith.divf %11, %12 : vector<16x1xf32>
    %14 = vector.broadcast %6 : vector<16x1xf32> to vector<16x32xf32>
    %15 = arith.subf %0, %14 : vector<16x32xf32>
    %cst_8 = arith.constant 9.99999996E-13 : f32
    %16 = vector.broadcast %cst_8 : f32 to vector<16x1xf32>
    %17 = arith.addf %13, %16 : vector<16x1xf32>
    %18 = math.rsqrt %17 : vector<16x1xf32>
    %19 = vector.broadcast %18 : vector<16x1xf32> to vector<16x32xf32>
    %20 = arith.mulf %15, %19 : vector<16x32xf32>
    %21 = vector.broadcast %1 : vector<1x32xf32> to vector<16x32xf32>
    %22 = arith.mulf %20, %21 : vector<16x32xf32>
    %23 = vector.broadcast %2 : vector<1x32xf32> to vector<16x32xf32>
    %24 = arith.addf %22, %23 : vector<16x32xf32>
    %c0_9 = arith.constant 0 : index
    %c0_10 = arith.constant 0 : index
    %25 = vector.load %arg3[%c0_9, %c0_10] : memref<16x32xf32, #tpu.memory_space<vmem>>, vector<16x32xf32>
    tpu.vector_store %arg3[%c0_9, %c0_10], %24 {strides = array<i32>} : memref<16x32xf32, #tpu.memory_space<vmem>>, vector<16x32xf32>,
    return
  }
}

</mosaic_0001>

<bundles_post_ra>
// kernel: tpu_custom_call.1
= control target key start
LH: loop header
LB: loop body
LE: loop exit
PB: predicated region body
PF: predicated region fallthrough
CT: control target
= control target key end

     0   :  { %8 = vsyncpa [#allocation3], 0  ;;  %s220_s0 = inlined_call_operand.hbm [shape: f32[16,32], index: 0, kind: input, shape index: {}]   ;;  %s221_s1 = inlined_call_operand.vmem [shape: f32[1,32], index: 1, kind: input, shape index: {}]   ;;  %s222_s2 = inlined_call_operand.vmem [shape: f32[1,32], index: 2, kind: input, shape index: {}]   ;;  %s223_s3 = inlined_call_operand.hbm [shape: f32[16,32], index: 3, kind: output, shape index: {}]  }
   0x1   :  { %9 = vsyncpa [#allocation4], 0  ;;  %s154_s12 = smov [#allocation2]   ;;  %s106_s16 = scalar_lea.hbm %s220_s0, 256 }
   0x2   :  { %s15_s13 = sshll.u32 %s154_s12, 4  ;;  %p107_p0 = scmp.ne.s32.totalorder %s220_s0, %s106_s16  ;;  %s16_s13 = int_to_ptr.vmem [resolvable:$true] %s15_s13 }
   0x3   :  { %p110_p1 = scmp.lt.u32.totalorder %s106_s16, %s220_s0 }
   0x5   :  { %p112_p2 = pnand %p110_p1, %p107_p0 }
   0x7   :  { %115 = shalt.err (!%p112_p2)
}
   0x8   :  { %s116_s21 = scalar_lea.vmem %s16_s13, 256  ;;  %p121_p4 = scmp.lt.s32.totalorder %s16_s13, %s16_s13 }
   0x9   :  { %p117_p3 = scmp.ne.s32.totalorder %s16_s13, %s116_s21  ;;  %p122_p5 = scmp.lt.s32.totalorder %s116_s21, %s116_s21 }
   0xb   :  { %p123_p6 = por %p122_p5, %p121_p4 }
   0xd   :  { %p124_p7 = pnand %p123_p6, %p117_p3 }
   0xf   :  { %127 = shalt.err (!%p124_p7)
}
  0x10   :  { %s155_s22 = smov 128   ;;  %s156_s23 = smov 8  }
  0x11   :  { %21 = dma.hbm_to_vmem [thread:$0]  %s220_s0, 256, %s16_s13, [#allocation3], %s155_s22, %s155_s22, %s156_s23  }
  0x12   :  { %150 = dma.done.wait [#allocation3], 256  }
  0x13   :  { %151 = vsyncadd [#allocation3], 4294967040  ;;  %vm33_vm0 = vcmask 261120   ;;  %v29_v0 = vld [vmem:[#allocation2] sm:$0xff]  ;;  %v30_v1 = vld [vmem:[#allocation2 + $0x8] sm:$0xff]  ;;  %s157_s29 = smov [#allocation5]  }
  0x14   :  { %v34_v2 = vsel %vm33_vm0, %v29_v0, 0.0  ;;  %v37_v3 = vsel %vm33_vm0, %v30_v1, 0.0  ;;  %v96_v21 = vld [vmem:[%s221_s1] ss:$0 sm:$0xff]  ;;  %s84_s30 = sshll.u32 %s157_s29, 4  ;;  %s85_s30 = int_to_ptr.vmem [resolvable:$true] %s84_s30 }
  0x15   :  { %35 = vadd.xlane.f32.xlu0 %v34_v2  ;;  %v97_v23 = vld [vmem:[%s222_s2] ss:$0 sm:$0xff]  ;;  %s128_s4 = scalar_lea.vmem %s85_s30, 256  ;;  %p133_p9 = scmp.lt.s32.totalorder %s85_s30, %s85_s30 }
  0x16   :  { %p129_p8 = scmp.ne.s32.totalorder %s85_s30, %s128_s4  ;;  %p134_p10 = scmp.lt.s32.totalorder %s128_s4, %s128_s4 }
  0x18   :  { %p135_p11 = por %p134_p10, %p133_p9 }
  0x19   :  { %38 = vadd.xlane.f32.xlu0 %v37_v3 }
  0x1a   :  { %p136_p12 = pnand %p135_p11, %p129_p8 }
  0xa2   :  { %v36_v4 = vpop.xlane.xlu0 %35 }
  0xa3   :  { %v41_v5 = vmul.f32 0.03125, %v36_v4 }
  0xa5   :  { %v43_v6 = vsub.f32 %v29_v0, %v41_v5 }
  0xa6   :  { %v39_v7 = vpop.xlane.xlu0 %38 }
  0xa7   :  { %v42_v8 = vmul.f32 0.03125, %v39_v7  ;;  %v45_v9 = vmul.f32 %v43_v6, %v43_v6 }
  0xa9   :  { %v44_v10 = vsub.f32 %v30_v1, %v42_v8  ;;  %v47_v11 = vsel %vm33_vm0, %v45_v9, 0.0 }
  0xaa   :  { %48 = vadd.xlane.f32.xlu1 %v47_v11 }
  0xab   :  { %v46_v12 = vmul.f32 %v44_v10, %v44_v10 }
  0xad   :  { %v50_v13 = vsel %vm33_vm0, %v46_v12, 0.0 }
  0xae   :  { %51 = vadd.xlane.f32.xlu1 %v50_v13 }
 0x137   :  { %v49_v14 = vpop.xlane.xlu1 %48 }
 0x138   :  { %v53_v15 = vmul.f32 0.03125, %v49_v14 }
 0x13a   :  { %v55_v16 = vadd.f32 1e-12, %v53_v15 }
 0x13b   :  { %v52_v17 = vpop.xlane.xlu1 %51 }
 0x13c   :  { %102 = vrsqrt.f32 %v55_v16  ;;  %v54_v18 = vmul.f32 0.03125, %v52_v17 }
 0x13e   :  { %v56_v19 = vadd.f32 1e-12, %v54_v18 }
 0x140   :  { %104 = vrsqrt.f32 %v56_v19 }
 0x146   :  { %v103_v20 = vpop.eup %102 }
 0x147   :  { %v59_v22 = vmul.f32 %v103_v20, %v43_v6 }
 0x149   :  { %v67_v24 = vmul.f32 %v96_v21, %v59_v22 }
 0x14a   :  { %v105_v25 = vpop.eup %104 }
 0x14b   :  { %v60_v26 = vmul.f32 %v105_v25, %v44_v10  ;;  %v75_v27 = vadd.f32 %v97_v23, %v67_v24 }
 0x14d   :  { %v68_v28 = vmul.f32 %v96_v21, %v60_v26  ;;  %77 = vst.msk [vmem:[#allocation5] sm:$0xff] %vm33_vm0, %v75_v27 }
 0x14f   :  { %v76_v29 = vadd.f32 %v97_v23, %v68_v28 }
 0x151   :  { %78 = vst.msk [vmem:[#allocation5 + $0x8] sm:$0xff] %vm33_vm0, %v76_v29 }
 0x152   :  { %139 = shalt.err (!%p136_p12)
}
 0x153   :  { %s140_s5 = scalar_lea.hbm %s223_s3, 256 }
 0x154   :  { %p141_p13 = scmp.ne.s32.totalorder %s223_s3, %s140_s5  ;;  %p144_p0 = scmp.lt.u32.totalorder %s140_s5, %s223_s3 }
 0x156   :  { %p146_p1 = pnand %p144_p0, %p141_p13 }
 0x158   :  { %149 = shalt.err (!%p146_p1)
}
 0x159   :  { %90 = dma.vmem_to_hbm [thread:$0]  %s85_s30, 256, %s223_s3, [#allocation4], %s155_s22, %s155_s22, %s156_s23  }
 0x15a   :  { %152 = dma.done.wait [#allocation4], 256  }
 0x15b   :  { %153 = vsyncadd [#allocation4], 4294967040 }
 0x15c   :  { %94 = vsyncpa [#allocation3], 1 }
 0x15d   :  { %95 = vsyncpa [#allocation4], 1 }

</bundles_post_ra>
